<compile_context>
chip_gen: v5e
topology: v5e:2x2
jax: 0.10.0
libtpu: 0.0.40
codegen_flags: <defaults>
</compile_context>

<pallas_src>
import jax
import jax.numpy as jnp
from jax.experimental import pallas as pl
from jax.experimental.pallas import tpu as pltpu


def _round_up(x, m):
    return (x + m - 1) // m * m


def _sublane(itemsize):
    # Sub-32-bit dtypes pack along sublanes: min second-minor tile is 8/16/32 rows.
    return {4: 8, 2: 16, 1: 32}.get(itemsize, 8)


# Double-buffered VMEM residency target (safe for v7x's 64 MiB/TC; well under v5e/v6e).
_VMEM_TILE_BUDGET = 40 << 20


def task_dense_kernel(xa_ref, w_ref, b_ref, o_ref, acc_ref):
    """Fused "concat + Linear": one MXU GEMM per (N, M, K) tile, f32 accumulation."""
    @pl.when(pl.program_id(2) == 0)
    def _():
        acc_ref[...] = jnp.zeros_like(acc_ref)

    acc_ref[...] += jnp.dot(xa_ref[...], w_ref[...],
                            preferred_element_type=jnp.float32)

    @pl.when(pl.program_id(2) == pl.num_programs(2) - 1)
    def _():
        o_ref[...] = (acc_ref[...] + b_ref[...].astype(jnp.float32)).astype(o_ref.dtype)


def prepare_task_dense_weights(weight, bias, weight_dtype=jnp.bfloat16):
    """One-time (frozen weights) prep.

    weight: (H, 2H) in PyTorch nn.Linear layout; bias: (H,).
    Returns:
      wp: (2*Hp, Hp) stacked [W[:, :H].T ; W[:, H:].T], zero-padded, stored in
          `weight_dtype` (bf16 by default; the kernel accumulates in f32).
          TODO(synk): on v5e/v6e int8 and on v7x fp8 storage would quarter the
          weight bytes; requires a dequant scale path not implemented here.
      bp: (1, Hp) f32 bias, zero-padded.
    """
    H = weight.shape[0]
    assert weight.shape == (H, 2 * H)
    Hp = _round_up(H, 128)
    pad = Hp - H
    w1 = jnp.pad(weight[:, :H].T, ((0, pad), (0, pad)))   # acts on pretrained features
    w2 = jnp.pad(weight[:, H:].T, ((0, pad), (0, pad)))   # acts on adapter features
    wp = jnp.concatenate([w1, w2], axis=0).astype(weight_dtype)   # (2*Hp, Hp)
    bp = jnp.pad(bias.reshape(1, H), ((0, 0), (0, pad))).astype(jnp.float32)
    return wp, bp


def _select_tiles(Mp, Hp, act_isz, w_isz, b_isz, out_isz):
    """Pick (tm, tn, tk) and the true double-buffered VMEM residency in bytes."""
    K = 2 * Hp
    tm = Mp if Mp <= 128 else 128

    def residency(tn, tk):
        per_step = (tm * tk * act_isz      # xa tile
                    + tk * tn * w_isz      # stacked-weight tile
                    + tn * b_isz           # bias tile
                    + tm * tn * out_isz)   # output tile
        return 2 * per_step + tm * tn * 4  # x2 double-buffers + f32 accumulator

    # N tile: largest that fits the budget while leaving >= 2 N tiles, so a
    # two-TensorCore chip (v7x) shards the dominant weight stream across cores.
    tn = None
    for cand in (512, 384, 256, 128):
        if Hp % cand == 0 and Hp // cand >= 2 and residency(cand, 256) <= _VMEM_TILE_BUDGET:
            tn = cand
            break
    if tn is None:
        tn = Hp if residency(Hp, 256) <= _VMEM_TILE_BUDGET else 128

    # K tile: largest multiple-of-128 divisor of 2*Hp that fits the budget.
    # tk == 2*Hp (single K step) keeps weights held across M tiles.
    tk = None
    cand = K
    while cand >= 128:
        if K % cand == 0 and cand % 128 == 0 and residency(tn, cand) <= _VMEM_TILE_BUDGET:
            tk = cand
            break
        cand -= 128
    if tk is None:
        tk = 128
    return tm, tn, tk, residency(tn, tk)


def adapter_ensemble_forward(last_hidden, adapter_out, wp, bp):
    """last_hidden, adapter_out: [B, S, H]; wp/bp from prepare_task_dense_weights."""
    B, S, H = last_hidden.shape
    K2, Hp = wp.shape
    assert K2 == 2 * Hp and H <= Hp
    dt = last_hidden.dtype
    act_isz = jnp.dtype(dt).itemsize
    w_isz = jnp.dtype(wp.dtype).itemsize
    b_isz = jnp.dtype(bp.dtype).itemsize
    out_isz = act_isz

    # ---- hoisted slice: only seq position 0 survives the module's forward ----
    x0 = last_hidden[:, 0, :]      # [B, H]
    a0 = adapter_out[:, 0, :]      # [B, H]

    # ---- row padding to the sublane granularity of the activation dtype ----
    sub = _sublane(act_isz)
    Mp = _round_up(max(B, 1), sub)
    if Mp > 128:
        Mp = _round_up(Mp, 128)

    tm, tn, tk, resid = _select_tiles(Mp, Hp, act_isz, w_isz, b_isz, out_isz)

    # xa = [x0 | a0], zero-padded: the wrapper-side concat lets the kernel run one
    # K = 2*Hp GEMM against the pre-stacked weight instead of two matmuls.
    xa = jnp.concatenate(
        [jnp.pad(x0, ((0, Mp - B), (0, Hp - H))),
         jnp.pad(a0, ((0, Mp - B), (0, Hp - H)))], axis=1)      # (Mp, 2*Hp)

    grid = (Hp // tn, Mp // tm, (2 * Hp) // tk)   # N outer, M middle, K inner

    # Explicit scoped-VMEM limit from the true residency (+ headroom); default limits
    # (16 MiB v5e / 32 MiB v6e+) are otherwise the binding constraint, not physical VMEM.
    vmem_limit = int(max(resid + (2 << 20), 16 << 20))

    k_steps = (2 * Hp) // tk
    cost = pl.CostEstimate(
        flops=2 * Mp * (2 * Hp) * Hp,
        transcendentals=0,
        bytes_accessed=int(
            Mp * 2 * Hp * act_isz * (Hp // tn)                        # xa, re-read per N tile
            + 2 * Hp * Hp * w_isz * (Mp // tm if k_steps > 1 else 1)  # weight stream
            + Hp * b_isz
            + Mp * Hp * out_isz),
    )

    sec0 = pl.pallas_call(
        task_dense_kernel,
        out_shape=jax.ShapeDtypeStruct((Mp, Hp), dt),
        grid_spec=pltpu.PrefetchScalarGridSpec(
            num_scalar_prefetch=0,
            grid=grid,
            in_specs=[
                pl.BlockSpec((tm, tk), lambda j, i, k: (i, k)),    # xa (CLS rows) tile
                pl.BlockSpec((tk, tn), lambda j, i, k: (k, j)),    # stacked bf16 weight tile
                pl.BlockSpec((1, tn), lambda j, i, k: (0, j)),     # bias tile (held over i, k)
            ],
            out_specs=pl.BlockSpec((tm, tn), lambda j, i, k: (i, j)),
            scratch_shapes=[pltpu.VMEM((tm, tn), jnp.float32)],    # f32 accumulator
        ),
        compiler_params=pltpu.CompilerParams(
            dimension_semantics=("parallel", "parallel", "arbitrary"),
            vmem_limit_bytes=vmem_limit,
        ),
        cost_estimate=cost,
    )(xa, wp, bp)

    return sec0[:B, :H]            # == sec_features[:, 0, :]


if __name__ == "__main__":
    B, S, H = 2, 8, 32
    key = jax.random.PRNGKey(0)
    k1, k2, k3, k4 = jax.random.split(key, 4)

    # pretrained_model_outputs[0] (last hidden states) and the sec_adapter output.
    # The sec_adapter is an arbitrary frozen external module, so its output is a
    # kernel input here (synthesized deterministically).
    last_hidden = jax.random.normal(k1, (B, S, H), dtype=jnp.float32)
    adapter_out = jax.random.normal(k2, (B, S, H), dtype=jnp.float32)

    # task_dense_sec = nn.Linear(2H, H): weight (H, 2H), bias (H),
    # deterministic uniform init like PyTorch's default (bound = 1/sqrt(fan_in)).
    bound = 1.0 / jnp.sqrt(2.0 * H)
    weight = jax.random.uniform(k3, (H, 2 * H), jnp.float32, -bound, bound)
    bias = jax.random.uniform(k4, (H,), jnp.float32, -bound, bound)

    # One-time weight prep (frozen): stack, transpose, pad, store bf16.
    wp, bp = prepare_task_dense_weights(weight, bias)

    out = adapter_ensemble_forward(last_hidden, adapter_out, wp, bp)
    out = jax.block_until_ready(out)

    # Pure-JAX reference: concat + dense + slice, against the bf16-rounded weights
    # the kernel actually streams (bias / activations stay f32).
    w_bf = weight.astype(jnp.bfloat16).astype(jnp.float32)
    ref = (jnp.concatenate([last_hidden, adapter_out], axis=2) @ w_bf.T + bias)[:, 0, :]
    assert out.shape == (B, H)
    assert jnp.allclose(out, ref, atol=1e-2, rtol=1e-2)

    print("KERNEL_OK")
</pallas_src>

<mosaic_0001>
module attributes {stable_mosaic.version = 11 : i64} {
  func.func @task_dense_kernel(%arg0: i32, %arg1: i32, %arg2: i32, %arg3: memref<8x256xf32, #tpu.memory_space<vmem>>, %arg4: memref<256x128xbf16, #tpu.memory_space<vmem>>, %arg5: memref<1x128xf32, #tpu.memory_space<vmem>>, %arg6: memref<8x128xf32, #tpu.memory_space<vmem>>, %arg7: memref<8x128xf32, #tpu.memory_space<vmem>>) attributes {dimension_semantics = [#tpu.dimension_semantics<parallel>, #tpu.dimension_semantics<parallel>, #tpu.dimension_semantics<arbitrary>], iteration_bounds = array<i64: 1, 1, 1>, scalar_prefetch = 0 : i64, scratch_operands = 1 : i64, tpu.core_type = #tpu.core_type<tc>, window_params = [{transform_indices = @transform_0, window_bounds = array<i64: 8, 256>}, {transform_indices = @transform_1, window_bounds = array<i64: 256, 128>}, {transform_indices = @transform_2, window_bounds = array<i64: 1, 128>}, {transform_indices = @transform_3, window_bounds = array<i64: 8, 128>}]} {
    %c0_i32 = arith.constant 0 : i32
    %0 = arith.cmpi eq, %arg2, %c0_i32 : i32
    %1 = arith.extui %0 : i1 to i32
    %c0_i32_0 = arith.constant 0 : i32
    %2 = arith.cmpi ne, %1, %c0_i32_0 : i32
    scf.if %2 {
      %cst_10 = arith.constant 0.000000e+00 : f32
      %12 = vector.broadcast %cst_10 : f32 to vector<8x128xf32>
      %c0_11 = arith.constant 0 : index
      %c0_12 = arith.constant 0 : index
      %13 = vector.load %arg7[%c0_11, %c0_12] : memref<8x128xf32, #tpu.memory_space<vmem>>, vector<8x128xf32>
      tpu.vector_store %arg7[%c0_11, %c0_12], %12 {strides = array<i32>} : memref<8x128xf32, #tpu.memory_space<vmem>>, vector<8x128xf32>,
    } else {
    }
    %c0 = arith.constant 0 : index
    %c0_1 = arith.constant 0 : index
    %3 = vector.load %arg7[%c0, %c0_1] : memref<8x128xf32, #tpu.memory_space<vmem>>, vector<8x128xf32>
    %c0_2 = arith.constant 0 : index
    %c0_3 = arith.constant 0 : index
    %4 = vector.load %arg3[%c0_2, %c0_3] : memref<8x256xf32, #tpu.memory_space<vmem>>, vector<8x256xf32>
    %c0_4 = arith.constant 0 : index
    %c0_5 = arith.constant 0 : index
    %5 = vector.load %arg4[%c0_4, %c0_5] : memref<256x128xbf16, #tpu.memory_space<vmem>>, vector<256x128xbf16>
    %cst = arith.constant dense<0.000000e+00> : vector<8x128xf32>
    %6 = tpu.matmul %4, %5, %cst {dimension_numbers = #tpu.dot_dimension_numbers<[1], [0], [0], [1], [0, 0, 1, 1], [], []>} : vector<8x256xf32>, vector<256x128xbf16>, vector<8x128xf32> -> vector<8x128xf32>
    %7 = arith.addf %3, %6 : vector<8x128xf32>
    %c0_6 = arith.constant 0 : index
    %c0_7 = arith.constant 0 : index
    %8 = vector.load %arg7[%c0_6, %c0_7] : memref<8x128xf32, #tpu.memory_space<vmem>>, vector<8x128xf32>
    tpu.vector_store %arg7[%c0_6, %c0_7], %7 {strides = array<i32>} : memref<8x128xf32, #tpu.memory_space<vmem>>, vector<8x128xf32>,
    %c0_i32_8 = arith.constant 0 : i32
    %9 = arith.cmpi eq, %arg2, %c0_i32_8 : i32
    %10 = arith.extui %9 : i1 to i32
    %c0_i32_9 = arith.constant 0 : i32
    %11 = arith.cmpi ne, %10, %c0_i32_9 : i32
    scf.if %11 {
      %c0_10 = arith.constant 0 : index
      %c0_11 = arith.constant 0 : index
      %12 = vector.load %arg7[%c0_10, %c0_11] : memref<8x128xf32, #tpu.memory_space<vmem>>, vector<8x128xf32>
      %c0_12 = arith.constant 0 : index
      %c0_13 = arith.constant 0 : index
      %13 = vector.load %arg5[%c0_12, %c0_13] : memref<1x128xf32, #tpu.memory_space<vmem>>, vector<1x128xf32>
      %14 = vector.broadcast %13 : vector<1x128xf32> to vector<8x128xf32>
      %15 = arith.addf %12, %14 : vector<8x128xf32>
      %c0_14 = arith.constant 0 : index
      %c0_15 = arith.constant 0 : index
      %16 = vector.load %arg6[%c0_14, %c0_15] : memref<8x128xf32, #tpu.memory_space<vmem>>, vector<8x128xf32>
      tpu.vector_store %arg6[%c0_14, %c0_15], %15 {strides = array<i32>} : memref<8x128xf32, #tpu.memory_space<vmem>>, vector<8x128xf32>,
    } else {
    }
    return
  }
  func.func @transform_0(%arg0: i32, %arg1: i32, %arg2: i32) -> (i32, i32) {
    %c0_i32 = arith.constant 0 : i32
    return %arg1, %arg2 : i32, i32
  }
  func.func @transform_1(%arg0: i32, %arg1: i32, %arg2: i32) -> (i32, i32) {
    %c0_i32 = arith.constant 0 : i32
    return %arg2, %arg0 : i32, i32
  }
  func.func @transform_2(%arg0: i32, %arg1: i32, %arg2: i32) -> (i32, i32) {
    %c0_i32 = arith.constant 0 : i32
    %c0_i32_0 = arith.constant 0 : i32
    return %c0_i32, %arg0 : i32, i32
  }
  func.func @transform_3(%arg0: i32, %arg1: i32, %arg2: i32) -> (i32, i32) {
    %c0_i32 = arith.constant 0 : i32
    return %arg1, %arg0 : i32, i32
  }
}

</mosaic_0001>

<bundles_post_ra>
// kernel: tpu_custom_call.1
= control target key start
LH: loop header
LB: loop body
LE: loop exit
PB: predicated region body
PF: predicated region fallthrough
CT: control target
= control target key end

     0   :  { %8 = vsyncpa [#allocation4], 0  ;;  %s436_s0 = inlined_call_operand.hbm [shape: f32[8,256], index: 0, kind: input, shape index: {}]   ;;  %s437_s1 = inlined_call_operand.hbm [shape: bf16[256,128], index: 1, kind: input, shape index: {}]   ;;  %s438_s2 = inlined_call_operand.vmem [shape: f32[1,128], index: 2, kind: input, shape index: {}]   ;;  %s439_s3 = inlined_call_operand.hbm [shape: f32[8,128], index: 3, kind: output, shape index: {}]  }
   0x1   :  { %9 = vsyncpa [#allocation7], 0 }
   0x2   :  { %10 = vsyncpa [#allocation5], 0  ;;  %s16_s14 = sshll.u32 %s436_s0, 4  ;;  %s399_s15 = smov [#allocation3]   ;;  %s17_s14 = int_to_ptr.hbm [resolvable:$true] %s16_s14 }
   0x3   :  { %s18_s16 = sshll.u32 %s399_s15, 4  ;;  %s26_s19 = sshll.u32 %s437_s1, 4  ;;  %s19_s16 = int_to_ptr.vmem [resolvable:$true] %s18_s16  ;;  %s27_s19 = int_to_ptr.hbm [resolvable:$true] %s26_s19 }
   0x4   :  { %21 = dma.hbm_to_vmem [thread:$0]  %s17_s14, 256, %s19_s16, [#allocation4]  }
   0x5   :  { %s400_s20 = smov [#allocation6]   ;;  %s401_s22 = smov 64  }
   0x6   :  { %s28_s21 = sshll.u32 %s400_s20, 4  ;;  %s402_s23 = smov 4   ;;  %s29_s21 = int_to_ptr.vmem [resolvable:$true] %s28_s21 }
   0x7   :  { %34 = dma.hbm_to_vmem [thread:$0]  %s27_s19, 2048, %s29_s21, [#allocation7], %s401_s22, %s401_s22, %s402_s23  }
   0x8   :  { %393 = dma.done.wait [#allocation4], 256  }
   0x9   :  { %394 = vsyncadd [#allocation4], 4294967040 }
   0xa   :  { %395 = dma.done.wait [#allocation7], 2048  }
   0xb   :  { %396 = vsyncadd [#allocation7], 4294965248  ;;  %v306_v0 = vld [vmem:[#allocation6 + $0x38] sm:$0xff]  ;;  %v305_v2 = vld [vmem:[#allocation6 + $0x30] sm:$0xff]  ;;  %s403_s24 = smov [#allocation8]   ;;  %s224_s28 = sshll.u32 %s439_s3, 4  ;;  %s225_s28 = int_to_ptr.hbm [resolvable:$true] %s224_s28 }
   0xc   :  { %v314_v1 = vld [vmem:[#allocation6 + $0x78] sm:$0xff]  ;;  %181 = vmatpush.bf16.msra.mxu0 %v306_v0  ;;  %v313_v3 = vld [vmem:[#allocation6 + $0x70] sm:$0xff]  ;;  %v304_v4 = vld [vmem:[#allocation6 + $0x28] sm:$0xff]  ;;  %s222_s25 = sshll.u32 %s403_s24, 4  ;;  %s223_s25 = int_to_ptr.vmem [resolvable:$true] %s222_s25 }
   0xd   :  { %193 = vmatpush.bf16.msra.mxu1 %v314_v1  ;;  %v312_v5 = vld [vmem:[#allocation6 + $0x68] sm:$0xff]  ;;  %v303_v6 = vld [vmem:[#allocation6 + $0x20] sm:$0xff]  ;;  %v302_v8 = vld [vmem:[#allocation6 + $0x18] sm:$0xff] }
   0xe   :  { %v311_v7 = vld [vmem:[#allocation6 + $0x60] sm:$0xff]  ;;  %v310_v9 = vld [vmem:[#allocation6 + $0x58] sm:$0xff]  ;;  %v301_v10 = vld [vmem:[#allocation6 + $0x10] sm:$0xff] }
   0xf   :  { %v309_v11 = vld [vmem:[#allocation6 + $0x50] sm:$0xff]  ;;  %v300_v12 = vld [vmem:[#allocation6 + $0x8] sm:$0xff]  ;;  %v299_v14 = vld [vmem:[#allocation6] sm:$0xff] }
  0x10   :  { %182 = vmatpush.bf16.msra.mxu0 %v305_v2  ;;  %v308_v13 = vld [vmem:[#allocation6 + $0x48] sm:$0xff]  ;;  %v307_v15 = vld [vmem:[#allocation6 + $0x40] sm:$0xff]  ;;  %v51_v16 = vld [vmem:[#allocation3] sm:$0xff] }
  0x11   :  { %194 = vmatpush.bf16.msra.mxu1 %v313_v3  ;;  %v52_v17 = vld [vmem:[#allocation3 + $0x8] sm:$0xff]  ;;  %v320_v18 = vld [vmem:[%s438_s2] ss:$0 sm:$0xff] }
  0x14   :  { %183 = vmatpush.bf16.msra.mxu0 %v304_v4 }
  0x15   :  { %195 = vmatpush.bf16.msra.mxu1 %v312_v5 }
  0x18   :  { %184 = vmatpush.bf16.msra.mxu0 %v303_v6 }
  0x19   :  { %196 = vmatpush.bf16.msra.mxu1 %v311_v7 }
  0x1c   :  { %185 = vmatpush.bf16.msra.mxu0 %v302_v8 }
  0x1d   :  { %197 = vmatpush.bf16.msra.mxu1 %v310_v9 }
  0x20   :  { %186 = vmatpush.bf16.msra.mxu0 %v301_v10 }
  0x21   :  { %198 = vmatpush.bf16.msra.mxu1 %v309_v11 }
  0x24   :  { %187 = vmatpush.bf16.msra.mxu0 %v300_v12 }
  0x25   :  { %199 = vmatpush.bf16.msra.mxu1 %v308_v13 }
  0x28   :  { %188 = vmatpush.bf16.msra.mxu0 %v299_v14 }
  0x29   :  { %200 = vmatpush.bf16.msra.mxu1 %v307_v15 }
  0x2b   :  { %189 = vmatmul.f32.vlgmr.msra.gmra.mxu0 %v51_v16 }
  0x2c   :  { %201 = vmatmul.f32.vlgmr.msra.gmra.mxu1 %v52_v17 }
  0xa8   :  { %v190_v19 = vpop.f32.mrf.mxu0 }
  0xa9   :  { %v202_v20 = vpop.f32.mrf.mxu1 }
  0xaa   :  { %v203_v21 = vadd.f32 %v202_v20, %v190_v19 }
  0xac   :  { %v215_v22 = vadd.f32 %v320_v18, %v203_v21 }
  0xae   :  { %216 = vst [vmem:[#allocation8] sm:$0xff] %v215_v22 }
  0xaf   :  { %227 = dma.vmem_to_hbm [thread:$0]  %s223_s25, 128, %s225_s28, [#allocation5]  }
  0xb0   :  { %397 = dma.done.wait [#allocation5], 128  }
  0xb1   :  { %398 = vsyncadd [#allocation5], 4294967168 }
  0xb2   :  { %232 = vsyncpa [#allocation4], 1 }
  0xb3   :  { %233 = vsyncpa [#allocation7], 1 }
  0xb4   :  { %234 = vsyncpa [#allocation5], 1 }

</bundles_post_ra>
